<compile_context>
chip_gen: v7x
topology: tpu7x:2x2x1
jax: 0.10.0
libtpu: 0.0.40
codegen_flags: <defaults>
</compile_context>

<pallas_src>
import jax
import jax.numpy as jnp
from jax.experimental import pallas as pl
from jax.experimental.pallas import tpu as pltpu


def _round_up(x: int, m: int) -> int:
    return ((x + m - 1) // m) * m


def _vmem_capacity_bytes() -> int:
    # Conservative fallback = 64 MiB (v7x per-TC VMEM, smallest of v5e/v6e/v7x).
    try:
        return int(pltpu.get_tpu_info().vmem_capacity_bytes)
    except Exception:
        return 64 << 20


def _linreg_kernel(w_ref, b_ref, x_ref, o_ref):
    # w_ref, b_ref: SMEM scalars (shape (1,)); x_ref / o_ref: VMEM tiles.
    w = w_ref[0]
    b = b_ref[0]
    o_ref[...] = (x_ref[...] * w + b).astype(o_ref.dtype)


def _linreg_2d(x2: jax.Array, weights: jax.Array, bias: jax.Array,
               *, target_tile_bytes: int) -> jax.Array:
    """Runs w*x+b on a lane-dense (rows, lanes) slab; lanes is a multiple of 128."""
    rows, lanes = x2.shape
    itemsize = jnp.dtype(x2.dtype).itemsize
    # Sublane packing per dtype: f32 -> 8, bf16/f16 -> 16, int8/fp8 -> 32.
    sublane = {4: 8, 2: 16, 1: 32}.get(itemsize, 8)

    bytes_per_row = lanes * itemsize
    max_tile_rows = max(sublane,
                        (target_tile_bytes // bytes_per_row) // sublane * sublane)
    if rows <= sublane:
        tile_rows = rows                 # block == full array dim (legal for tiny inputs)
    else:
        tile_rows = min(max_tile_rows, (rows // sublane) * sublane)
    grid = (pl.cdiv(rows, tile_rows),)   # last block may be partial (masked writes)

    tile_bytes = tile_rows * lanes * itemsize
    # in + out, double-buffered, plus headroom; capped at 3/4 of physical VMEM.
    vmem_limit = int(min(_vmem_capacity_bytes() * 3 // 4,
                         max(16 << 20, 4 * tile_bytes + (6 << 20))))

    return pl.pallas_call(
        _linreg_kernel,
        out_shape=jax.ShapeDtypeStruct((rows, lanes), x2.dtype),
        grid_spec=pltpu.PrefetchScalarGridSpec(
            num_scalar_prefetch=0,
            grid=grid,
            in_specs=[
                pl.BlockSpec(memory_space=pltpu.SMEM),               # weights (1,)
                pl.BlockSpec(memory_space=pltpu.SMEM),               # bias (1,)
                pl.BlockSpec((tile_rows, lanes), lambda i: (i, 0)),  # x tile
            ],
            out_specs=pl.BlockSpec((tile_rows, lanes), lambda i: (i, 0)),
        ),
        compiler_params=pltpu.CompilerParams(
            dimension_semantics=("parallel",),     # megacore sharding on v7x
            vmem_limit_bytes=vmem_limit,
        ),
        # TODO(synk): pass input_output_aliases={2: 0} when callers donate x
        #   (no bandwidth change, halves peak HBM footprint for huge x).
        # TODO(synk): if an xprof trace shows gaps between step DMAs, add
        #   pipeline_mode=pl.Buffered(3) to the x/out BlockSpecs (+ grow vmem_limit).
        # TODO(synk): on v7x, verify both TensorCores receive grid steps; if not,
        #   switch this axis to pltpu.CORE_PARALLEL for large inputs.
    )(weights, bias, x2)


def _pick_lanes(total: int) -> tuple[int, bool]:
    """Largest lane width (multiple of 128) dividing `total`; else pad fallback."""
    for lanes in (512, 256, 128):
        if total >= lanes and total % lanes == 0:
            return lanes, False
    return 512, True


@jax.jit
def linear_regression_forward(x: jax.Array, weights: jax.Array,
                              bias: jax.Array) -> jax.Array:
    """Computes weights * x + bias (scalar broadcast), like the torch module."""
    orig_shape = x.shape
    total = int(x.size)
    if total == 0:
        return (x * weights[0] + bias[0]).reshape(orig_shape)

    target_tile_bytes = 8 << 20   # ~8 MiB per streamed tile

    lanes, needs_pad = _pick_lanes(total)
    x_flat = x.reshape(-1)        # free contiguous reshape (view under XLA)

    if not needs_pad:
        # Fast path (any size divisible by 128): no copies at all.
        rows = total // lanes
        out2 = _linreg_2d(x_flat.reshape(rows, lanes), weights, bias,
                          target_tile_bytes=target_tile_bytes)
        return out2.reshape(orig_shape)

    # Rare fallback: size not a multiple of 128. Pad only to the next multiple
    # of `lanes` (<= lanes-1 extra elements), not a whole tile.
    # TODO(synk): for very large non-128-aligned inputs this still costs one
    #   extra read+write of x (pad) and of the output (slice); removing it
    #   would require manual DMA from a raw 1-D HBM ref (memory_space=pl.ANY).
    padded = _round_up(total, lanes)
    rows = padded // lanes
    x2 = jnp.pad(x_flat, (0, padded - total)).reshape(rows, lanes)
    out2 = _linreg_2d(x2, weights, bias, target_tile_bytes=target_tile_bytes)
    return out2.reshape(-1)[:total].reshape(orig_shape)


if __name__ == "__main__":
    key = jax.random.PRNGKey(0)
    k_w, k_b, k1, k2, k3 = jax.random.split(key, 5)

    # Deterministic parameter init mirroring torch.randn(1) for weights & bias.
    weights = jax.random.normal(k_w, (1,), dtype=jnp.float32)
    bias = jax.random.normal(k_b, (1,), dtype=jnp.float32)

    test_inputs = [
        jax.random.normal(k1, (2, 4, 16, 16), dtype=jnp.float32),   # aligned, single block
        jax.random.normal(k2, (3, 1000, 128), dtype=jnp.float32),   # multi-block + partial last block
        jax.random.normal(k3, (4, 16, 37), dtype=jnp.float32),      # non-128-aligned fallback path
    ]

    for x in test_inputs:
        y = jax.block_until_ready(linear_regression_forward(x, weights, bias))
        ref = weights[0] * x + bias[0]
        assert y.shape == x.shape, f"shape mismatch: {y.shape} vs {x.shape}"
        assert y.dtype == x.dtype, "dtype mismatch"
        assert jnp.allclose(y, ref, atol=1e-6, rtol=1e-6), "value mismatch vs reference"

    print("KERNEL_OK")
</pallas_src>

<mosaic_0001>
module attributes {stable_mosaic.version = 11 : i64} {
  func.func @_linreg_kernel(%arg0: i32, %arg1: memref<1xf32, #tpu.memory_space<smem>>, %arg2: memref<1xf32, #tpu.memory_space<smem>>, %arg3: memref<4x512xf32, #tpu.memory_space<vmem>>, %arg4: memref<4x512xf32, #tpu.memory_space<vmem>>) attributes {dimension_semantics = [#tpu.dimension_semantics<parallel>], iteration_bounds = array<i64: 1>, scalar_prefetch = 0 : i64, scratch_operands = 0 : i64, tpu.core_type = #tpu.core_type<tc>, window_params = [{transform_indices = @transform_0, window_bounds = array<i64: 1>}, {transform_indices = @transform_1, window_bounds = array<i64: 1>}, {transform_indices = @transform_2, window_bounds = array<i64: 4, 512>}, {transform_indices = @transform_3, window_bounds = array<i64: 4, 512>}]} {
    %c0 = arith.constant 0 : index
    %0 = memref.load %arg1[%c0] : memref<1xf32, #tpu.memory_space<smem>>
    %c0_0 = arith.constant 0 : index
    %1 = memref.load %arg2[%c0_0] : memref<1xf32, #tpu.memory_space<smem>>
    %c0_1 = arith.constant 0 : index
    %c0_2 = arith.constant 0 : index
    %2 = vector.load %arg3[%c0_1, %c0_2] : memref<4x512xf32, #tpu.memory_space<vmem>>, vector<4x512xf32>
    %3 = vector.broadcast %0 : f32 to vector<4x512xf32>
    %4 = arith.mulf %2, %3 : vector<4x512xf32>
    %5 = vector.broadcast %1 : f32 to vector<4x512xf32>
    %6 = arith.addf %4, %5 : vector<4x512xf32>
    %c0_3 = arith.constant 0 : index
    %c0_4 = arith.constant 0 : index
    %7 = vector.load %arg4[%c0_3, %c0_4] : memref<4x512xf32, #tpu.memory_space<vmem>>, vector<4x512xf32>
    tpu.vector_store %arg4[%c0_3, %c0_4], %6 {strides = array<i32>} : memref<4x512xf32, #tpu.memory_space<vmem>>, vector<4x512xf32>,
    return
  }
  func.func @transform_0(%arg0: i32) -> i32 {
    %c0_i32 = arith.constant 0 : i32
    %c0_i32_0 = arith.constant 0 : i32
    return %c0_i32 : i32
  }
  func.func @transform_1(%arg0: i32) -> i32 {
    %c0_i32 = arith.constant 0 : i32
    %c0_i32_0 = arith.constant 0 : i32
    return %c0_i32 : i32
  }
  func.func @transform_2(%arg0: i32) -> (i32, i32) {
    %c0_i32 = arith.constant 0 : i32
    %c0_i32_0 = arith.constant 0 : i32
    return %arg0, %c0_i32 : i32, i32
  }
  func.func @transform_3(%arg0: i32) -> (i32, i32) {
    %c0_i32 = arith.constant 0 : i32
    %c0_i32_0 = arith.constant 0 : i32
    return %arg0, %c0_i32 : i32, i32
  }
}

</mosaic_0001>

<bundles_post_ra>
// kernel: linear_regression_forward.1
= control target key start
LH: loop header
LB: loop body
LE: loop exit
PB: predicated region body
PF: predicated region fallthrough
CT: control target
= control target key end

     0   :  { %s70_s0 = inlined_call_operand.<no memory space> [shape: f32[1], index: 0, kind: input, shape index: {}]   ;;  %s71_s1 = inlined_call_operand.<no memory space> [shape: f32[1], index: 1, kind: input, shape index: {}]   ;;  %s72_s2 = inlined_call_operand.vmem [shape: f32[4,512], index: 2, kind: input, shape index: {}]   ;;  %s73_s3 = inlined_call_operand.vmem [shape: f32[4,512], index: 3, kind: output, shape index: {}]  }
   0x1   :  { %v18_v0 = vld [vmem:[%s72_s2] sm:$0xff]  ;;  %v20_v1 = vstv %s70_s0  ;;  %v23_v2 = vstv %s71_s1  ;;  %v19_v3 = vld [vmem:[%s72_s2 + $0x8] sm:$0xff] }
   0x2   :  { %v21_v4 = vmul.f32 %v20_v1, %v18_v0  ;;  %v22_v5 = vmul.f32 %v20_v1, %v19_v3 }
   0x4   :  { %v24_v6 = vadd.f32 %v23_v2, %v21_v4  ;;  %v25_v7 = vadd.f32 %v23_v2, %v22_v5 }
   0x6   :  { %26 = vst [vmem:[%s73_s3] sm:$0xff] %v24_v6  ;;  %27 = vst [vmem:[%s73_s3 + $0x8] sm:$0xff] %v25_v7 }

</bundles_post_ra>
